<compile_context>
chip_gen: v6e
topology: v6e:2x2x1
jax: 0.10.0
libtpu: 0.0.40
codegen_flags: <defaults>
</compile_context>

<pallas_src>
import functools

import jax
import jax.numpy as jnp
import numpy as np
from jax.experimental import pallas as pl
from jax.experimental.pallas import tpu as pltpu

EPS = 1e-5
LANE = 128
SUBLANE = 8


def _round_up(x, m):
    return (x + m - 1) // m * m


def _tpu_vmem_bytes():
    try:
        return int(pltpu.get_tpu_info().vmem_capacity_bytes)
    except Exception:
        return 64 * 1024 * 1024  # conservative default: v7x has the least VMEM


# ----------------------------------------------------------------------------
# Kernel
# ----------------------------------------------------------------------------
def ddc2_kernel(x_ref, w1_ref, b1_ref, g1_ref, be1_ref,
                w2_ref, g2_ref, be2_ref,
                out_ref, hid_ref,
                s1_ref, s2_ref, t1_ref, t2_ref,
                *, n_rows, hidden_dim, tile_n, needs_mask):
    phase = pl.program_id(0)
    tile = pl.program_id(1)
    inv_n = jnp.float32(1.0 / n_rows)

    @pl.when(jnp.logical_and(phase == 0, tile == 0))
    def _init():
        s1_ref[...] = jnp.zeros_like(s1_ref)
        s2_ref[...] = jnp.zeros_like(s2_ref)
        t1_ref[...] = jnp.zeros_like(t1_ref)
        t2_ref[...] = jnp.zeros_like(t2_ref)

    # ---- h = ReLU(x @ W1 + b1), recomputed in every phase (cheaper than HBM
    # staging of h). bf16 operands feed the MXU at full rate; f32 accumulation.
    h = jnp.dot(x_ref[...].astype(jnp.bfloat16), w1_ref[...],
                preferred_element_type=jnp.float32)
    h = jnp.maximum(h + b1_ref[...], 0.0)

    # Row-validity mask for the zero-padded tail tile (stats only).
    if needs_mask:
        row = jax.lax.broadcasted_iota(jnp.int32, (tile_n, 1), 0) + tile * tile_n
        rmask = row < n_rows
    else:
        rmask = None

    @pl.when(phase == 0)
    def _phase0():
        hm = h if rmask is None else jnp.where(rmask, h, 0.0)
        s1_ref[...] += jnp.sum(hm, axis=0, keepdims=True)
        s2_ref[...] += jnp.sum(hm * hm, axis=0, keepdims=True)

    # ---- BN1 folded to per-feature scale/shift; o = h_bn @ W2 ----------------
    # NOTE: single-pass variance (E[x^2] - mean^2) in f32, clamped >= 0. Fine at
    # these activation scales; use a shifted two-pass form if |mean| >> std.
    mean1 = s1_ref[...] * inv_n
    var1 = jnp.maximum(s2_ref[...] * inv_n - mean1 * mean1, 0.0)
    a1 = g1_ref[...] * jax.lax.rsqrt(var1 + EPS)
    c1 = be1_ref[...] - mean1 * a1
    h_bn = h * a1 + c1
    o = jnp.dot(h_bn.astype(jnp.bfloat16), w2_ref[...],
                preferred_element_type=jnp.float32)

    @pl.when(phase == 1)
    def _phase1():
        om = o if rmask is None else jnp.where(rmask, o, 0.0)
        t1_ref[...] += jnp.sum(om, axis=0, keepdims=True)
        t2_ref[...] += jnp.sum(om * om, axis=0, keepdims=True)

    @pl.when(phase == 2)
    def _phase2():
        mean2 = t1_ref[...] * inv_n
        var2 = jnp.maximum(t2_ref[...] * inv_n - mean2 * mean2, 0.0)
        a2 = g2_ref[...] * jax.lax.rsqrt(var2 + EPS)
        c2 = be2_ref[...] - mean2 * a2
        out_ref[...] = (o * a2 + c2).astype(out_ref.dtype)
        # Unpadded (tile_n, hidden_dim) store: masked vst, ~28% less writeback
        # than storing the 128-wide padded block.
        hid_ref[...] = h_bn[:, :hidden_dim].astype(hid_ref.dtype)


# ----------------------------------------------------------------------------
# Wrapper
# ----------------------------------------------------------------------------
def _pick_tile_n(n_rows, input_dim, h_pad, hidden_dim, n_clusters):
    """Largest batch tile that fits the per-generation VMEM budget."""
    budget = int(_tpu_vmem_bytes() * 0.40)  # headroom: double buffers + compiler scratch
    per_row = (
        2 * input_dim * 4                      # x tile (double-buffered, f32)
        + 2 * (hidden_dim + n_clusters) * 4    # hid / out tiles (double-buffered, f32)
        + 2 * h_pad * 4                        # h, h_bn (f32)
        + 2 * h_pad * 2                        # bf16 copies feeding the MXU
        + 2 * n_clusters * 4                   # o and masked copy
        + 256                                  # masks / misc temporaries
    )
    tile = max(SUBLANE, min(budget // per_row, 4096, _round_up(n_rows, SUBLANE)))
    return (tile // SUBLANE) * SUBLANE


def prepare_params(params):
    """One-time parameter prep, hoisted out of the per-call forward.

    Pads the hidden (lane) dim to 128 with ZEROS (required: zero padding of
    b1/gamma1/beta1 and of W2's extra rows keeps the padded lanes exactly zero)
    and pre-casts the matmul weights to bf16 (halves weight DMA bytes).
    Linear2's bias is dropped: BN2's training-mode mean subtraction cancels it.
    """
    hidden_dim = params["w1"].shape[1]
    n_clusters = params["w2"].shape[1]
    h_pad = _round_up(hidden_dim, LANE)

    def pad_cols(a):
        return jnp.pad(a, ((0, 0), (0, h_pad - a.shape[1])))

    prepped = dict(
        w1=pad_cols(params["w1"]).astype(jnp.bfloat16),
        b1=pad_cols(params["b1"]),
        g1=pad_cols(params["g1"]),
        be1=pad_cols(params["beta1"]),
        w2=jnp.pad(params["w2"],
                   ((0, h_pad - hidden_dim), (0, 0))).astype(jnp.bfloat16),
        g2=params["g2"],
        be2=params["beta2"],
    )
    meta = dict(hidden_dim=hidden_dim, n_clusters=n_clusters, h_pad=h_pad)
    return prepped, meta


def ddc2_forward(x, prepped, *, meta, tile_n=None):
    """x: (N, input_dim) float32. Returns (output, hidden) like DDC2.forward."""
    n_rows, input_dim = x.shape
    hidden_dim = meta["hidden_dim"]
    n_clusters = meta["n_clusters"]
    h_pad = meta["h_pad"]

    if tile_n is None:
        tile_n = _pick_tile_n(n_rows, input_dim, h_pad, hidden_dim, n_clusters)
    n_pad = _round_up(n_rows, tile_n)
    num_tiles = n_pad // tile_n
    x_in = x if n_pad == n_rows else jnp.pad(x, ((0, n_pad - n_rows), (0, 0)))

    kernel = functools.partial(
        ddc2_kernel, n_rows=n_rows, hidden_dim=hidden_dim, tile_n=tile_n,
        needs_mask=(n_pad != n_rows))

    const = lambda p, i: (0, 0)      # weights/params: VMEM-resident across tiles
    per_tile = lambda p, i: (i, 0)   # batch-tiled arrays

    out, hid = pl.pallas_call(
        kernel,
        out_shape=(
            jax.ShapeDtypeStruct((n_pad, n_clusters), jnp.float32),
            jax.ShapeDtypeStruct((n_pad, hidden_dim), jnp.float32),
        ),
        grid_spec=pltpu.PrefetchScalarGridSpec(
            num_scalar_prefetch=0,
            grid=(3, num_tiles),              # (phase, batch tile); phase outermost
            in_specs=[
                pl.BlockSpec((tile_n, input_dim), per_tile),   # x
                pl.BlockSpec((input_dim, h_pad), const),       # W1 (bf16)
                pl.BlockSpec((1, h_pad), const),               # b1
                pl.BlockSpec((1, h_pad), const),               # gamma1
                pl.BlockSpec((1, h_pad), const),               # beta1
                pl.BlockSpec((h_pad, n_clusters), const),      # W2 (bf16)
                pl.BlockSpec((1, n_clusters), const),          # gamma2
                pl.BlockSpec((1, n_clusters), const),          # beta2
            ],
            out_specs=(
                pl.BlockSpec((tile_n, n_clusters), per_tile),  # output
                pl.BlockSpec((tile_n, hidden_dim), per_tile),  # hidden
            ),
            scratch_shapes=[
                pltpu.VMEM((1, h_pad), jnp.float32),       # sum(h)
                pltpu.VMEM((1, h_pad), jnp.float32),       # sum(h*h)
                pltpu.VMEM((1, n_clusters), jnp.float32),  # sum(o)
                pltpu.VMEM((1, n_clusters), jnp.float32),  # sum(o*o)
            ],
        ),
        compiler_params=pltpu.CompilerParams(
            # phase must be sequential; tile axis accumulates into scratch.
            dimension_semantics=("arbitrary", "arbitrary"),
            vmem_limit_bytes=int(_tpu_vmem_bytes() * 3 // 4),
        ),
    )(x_in, prepped["w1"], prepped["b1"], prepped["g1"], prepped["be1"],
      prepped["w2"], prepped["g2"], prepped["be2"])

    if n_pad != n_rows:
        out, hid = out[:n_rows], hid[:n_rows]
    return out, hid


# ----------------------------------------------------------------------------
# Pure-JAX reference (same bf16-operand / f32-accumulate matmul precision)
# ----------------------------------------------------------------------------
def ddc2_reference(x, params):
    def bn(a, g, b):
        m = jnp.mean(a, axis=0, keepdims=True)
        v = jnp.mean((a - m) ** 2, axis=0, keepdims=True)
        return (a - m) * jax.lax.rsqrt(v + EPS) * g + b

    h = jnp.dot(x.astype(jnp.bfloat16), params["w1"].astype(jnp.bfloat16),
                preferred_element_type=jnp.float32) + params["b1"]
    h = jnp.maximum(h, 0.0)
    h_bn = bn(h, params["g1"], params["beta1"])
    o = jnp.dot(h_bn.astype(jnp.bfloat16), params["w2"].astype(jnp.bfloat16),
                preferred_element_type=jnp.float32) + params["b2"]
    return bn(o, params["g2"], params["beta2"]), h_bn


def init_params(key, input_dim, n_clusters, hidden_dim=100):
    """Deterministic synthetic parameters matching the PyTorch module's shapes.

    PyTorch Linear stores weight as (out, in); we store the transpose (in, out)
    so the kernel computes x @ W directly.
    """
    k1, k2, k3, k4, k5, k6 = jax.random.split(key, 6)
    return {
        "w1": jax.random.normal(k1, (input_dim, hidden_dim), jnp.float32) * 0.1,
        "b1": jax.random.normal(k2, (1, hidden_dim), jnp.float32) * 0.1,
        "g1": 1.0 + 0.1 * jax.random.normal(k3, (1, hidden_dim), jnp.float32),
        "beta1": 0.1 * jax.random.normal(k4, (1, hidden_dim), jnp.float32),
        "w2": jax.random.normal(k5, (hidden_dim, n_clusters), jnp.float32) * 0.1,
        "b2": jax.random.normal(k6, (1, n_clusters), jnp.float32) * 0.1,
        "g2": jnp.ones((1, n_clusters), jnp.float32),
        "beta2": jnp.zeros((1, n_clusters), jnp.float32),
    }


if __name__ == "__main__":
    key = jax.random.PRNGKey(0)
    kx, kp, kx2 = jax.random.split(key, 3)

    batch, input_dim, n_clusters, hidden_dim = 8, 32, 8, 100

    params = init_params(kp, input_dim, n_clusters, hidden_dim)
    prepped, meta = prepare_params(params)   # one-time prep, off the hot path

    # --- small single-tile run ------------------------------------------------
    x = jax.random.normal(kx, (batch, input_dim), jnp.float32)
    fwd = jax.jit(functools.partial(ddc2_forward, meta=meta))
    output, hidden = fwd(x, prepped)
    jax.block_until_ready((output, hidden))
    assert output.shape == (batch, n_clusters)
    assert hidden.shape == (batch, hidden_dim)

    ref_out, ref_hid = jax.jit(ddc2_reference)(x, params)
    np.testing.assert_allclose(np.asarray(output), np.asarray(ref_out),
                               atol=2e-2, rtol=2e-2)
    np.testing.assert_allclose(np.asarray(hidden), np.asarray(ref_hid),
                               atol=2e-2, rtol=2e-2)

    # --- multi-tile + padded-tail path (3 tiles of 16 rows, 8 masked pad rows) -
    batch2 = 40
    x2 = jax.random.normal(kx2, (batch2, input_dim), jnp.float32)
    fwd2 = jax.jit(functools.partial(ddc2_forward, meta=meta, tile_n=16))
    out2, hid2 = fwd2(x2, prepped)
    jax.block_until_ready((out2, hid2))
    ref_out2, ref_hid2 = jax.jit(ddc2_reference)(x2, params)
    np.testing.assert_allclose(np.asarray(out2), np.asarray(ref_out2),
                               atol=2e-2, rtol=2e-2)
    np.testing.assert_allclose(np.asarray(hid2), np.asarray(ref_hid2),
                               atol=2e-2, rtol=2e-2)

    print("KERNEL_OK")
</pallas_src>

<mosaic_0001>
module attributes {stable_mosaic.version = 11 : i64} {
  func.func @ddc2_kernel(%arg0: i32, %arg1: i32, %arg2: memref<8x32xf32, #tpu.memory_space<vmem>>, %arg3: memref<32x128xbf16, #tpu.memory_space<vmem>>, %arg4: memref<1x128xf32, #tpu.memory_space<vmem>>, %arg5: memref<1x128xf32, #tpu.memory_space<vmem>>, %arg6: memref<1x128xf32, #tpu.memory_space<vmem>>, %arg7: memref<128x8xbf16, #tpu.memory_space<vmem>>, %arg8: memref<1x8xf32, #tpu.memory_space<vmem>>, %arg9: memref<1x8xf32, #tpu.memory_space<vmem>>, %arg10: memref<8x8xf32, #tpu.memory_space<vmem>>, %arg11: memref<8x100xf32, #tpu.memory_space<vmem>>, %arg12: memref<1x128xf32, #tpu.memory_space<vmem>>, %arg13: memref<1x128xf32, #tpu.memory_space<vmem>>, %arg14: memref<1x8xf32, #tpu.memory_space<vmem>>, %arg15: memref<1x8xf32, #tpu.memory_space<vmem>>) attributes {dimension_semantics = [#tpu.dimension_semantics<arbitrary>, #tpu.dimension_semantics<arbitrary>], iteration_bounds = array<i64: 3, 1>, scalar_prefetch = 0 : i64, scratch_operands = 4 : i64, tpu.core_type = #tpu.core_type<tc>, window_params = [{transform_indices = @transform_0, window_bounds = array<i64: 8, 32>}, {pipeline_mode = #tpu.pipeline_mode<synchronous>, transform_indices = @transform_1, window_bounds = array<i64: 32, 128>}, {pipeline_mode = #tpu.pipeline_mode<synchronous>, transform_indices = @transform_2, window_bounds = array<i64: 1, 128>}, {pipeline_mode = #tpu.pipeline_mode<synchronous>, transform_indices = @transform_3, window_bounds = array<i64: 1, 128>}, {pipeline_mode = #tpu.pipeline_mode<synchronous>, transform_indices = @transform_4, window_bounds = array<i64: 1, 128>}, {pipeline_mode = #tpu.pipeline_mode<synchronous>, transform_indices = @transform_5, window_bounds = array<i64: 128, 8>}, {pipeline_mode = #tpu.pipeline_mode<synchronous>, transform_indices = @transform_6, window_bounds = array<i64: 1, 8>}, {pipeline_mode = #tpu.pipeline_mode<synchronous>, transform_indices = @transform_7, window_bounds = array<i64: 1, 8>}, {transform_indices = @transform_8, window_bounds = array<i64: 8, 8>}, {transform_indices = @transform_9, window_bounds = array<i64: 8, 100>}]} {
    %c0_i32 = arith.constant 0 : i32
    %0 = arith.cmpi eq, %arg0, %c0_i32 : i32
    %c0_i32_0 = arith.constant 0 : i32
    %1 = arith.cmpi eq, %arg1, %c0_i32_0 : i32
    %2 = arith.andi %0, %1 : i1
    %3 = arith.extui %2 : i1 to i32
    %c0_i32_1 = arith.constant 0 : i32
    %4 = arith.cmpi ne, %3, %c0_i32_1 : i32
    scf.if %4 {
      %cst_28 = arith.constant 0.000000e+00 : f32
      %48 = vector.broadcast %cst_28 : f32 to vector<1x128xf32>
      %c0_29 = arith.constant 0 : index
      %c0_30 = arith.constant 0 : index
      %49 = vector.load %arg12[%c0_29, %c0_30] : memref<1x128xf32, #tpu.memory_space<vmem>>, vector<1x128xf32>
      tpu.vector_store %arg12[%c0_29, %c0_30], %48 {strides = array<i32>} : memref<1x128xf32, #tpu.memory_space<vmem>>, vector<1x128xf32>,
      %cst_31 = arith.constant 0.000000e+00 : f32
      %50 = vector.broadcast %cst_31 : f32 to vector<1x128xf32>
      %c0_32 = arith.constant 0 : index
      %c0_33 = arith.constant 0 : index
      %51 = vector.load %arg13[%c0_32, %c0_33] : memref<1x128xf32, #tpu.memory_space<vmem>>, vector<1x128xf32>
      tpu.vector_store %arg13[%c0_32, %c0_33], %50 {strides = array<i32>} : memref<1x128xf32, #tpu.memory_space<vmem>>, vector<1x128xf32>,
      %cst_34 = arith.constant 0.000000e+00 : f32
      %52 = vector.broadcast %cst_34 : f32 to vector<1x8xf32>
      %c0_35 = arith.constant 0 : index
      %c0_36 = arith.constant 0 : index
      %53 = vector.load %arg14[%c0_35, %c0_36] : memref<1x8xf32, #tpu.memory_space<vmem>>, vector<1x8xf32>
      tpu.vector_store %arg14[%c0_35, %c0_36], %52 {strides = array<i32>} : memref<1x8xf32, #tpu.memory_space<vmem>>, vector<1x8xf32>,
      %cst_37 = arith.constant 0.000000e+00 : f32
      %54 = vector.broadcast %cst_37 : f32 to vector<1x8xf32>
      %c0_38 = arith.constant 0 : index
      %c0_39 = arith.constant 0 : index
      %55 = vector.load %arg15[%c0_38, %c0_39] : memref<1x8xf32, #tpu.memory_space<vmem>>, vector<1x8xf32>
      tpu.vector_store %arg15[%c0_38, %c0_39], %54 {strides = array<i32>} : memref<1x8xf32, #tpu.memory_space<vmem>>, vector<1x8xf32>,
    } else {
    }
    %c0 = arith.constant 0 : index
    %c0_2 = arith.constant 0 : index
    %5 = vector.load %arg2[%c0, %c0_2] : memref<8x32xf32, #tpu.memory_space<vmem>>, vector<8x32xf32>
    %6 = arith.truncf %5 : vector<8x32xf32> to vector<8x32xbf16>
    %c0_3 = arith.constant 0 : index
    %c0_4 = arith.constant 0 : index
    %7 = vector.load %arg3[%c0_3, %c0_4] : memref<32x128xbf16, #tpu.memory_space<vmem>>, vector<32x128xbf16>
    %cst = arith.constant dense<0.000000e+00> : vector<8x128xf32>
    %8 = tpu.matmul %6, %7, %cst {dimension_numbers = #tpu.dot_dimension_numbers<[1], [0], [0], [1], [0, 0, 1, 1], [], []>} : vector<8x32xbf16>, vector<32x128xbf16>, vector<8x128xf32> -> vector<8x128xf32>
    %c0_5 = arith.constant 0 : index
    %c0_6 = arith.constant 0 : index
    %9 = vector.load %arg4[%c0_5, %c0_6] : memref<1x128xf32, #tpu.memory_space<vmem>>, vector<1x128xf32>
    %10 = vector.broadcast %9 : vector<1x128xf32> to vector<8x128xf32>
    %11 = arith.addf %8, %10 : vector<8x128xf32>
    %cst_7 = arith.constant 0.000000e+00 : f32
    %12 = vector.broadcast %cst_7 : f32 to vector<8x128xf32>
    %13 = arith.maximumf %11, %12 : vector<8x128xf32>
    %c0_i32_8 = arith.constant 0 : i32
    %14 = arith.cmpi eq, %arg0, %c0_i32_8 : i32
    %15 = arith.extui %14 : i1 to i32
    %c0_i32_9 = arith.constant 0 : i32
    %16 = arith.cmpi ne, %15, %c0_i32_9 : i32
    scf.if %16 {
      %c0_28 = arith.constant 0 : index
      %c0_29 = arith.constant 0 : index
      %48 = vector.load %arg12[%c0_28, %c0_29] : memref<1x128xf32, #tpu.memory_space<vmem>>, vector<1x128xf32>
      %cst_30 = arith.constant dense<0.000000e+00> : vector<128xf32>
      %49 = vector.multi_reduction <add>, %13, %cst_30 [0] : vector<8x128xf32> to vector<128xf32>
      %50 = vector.shape_cast %49 : vector<128xf32> to vector<1x128xf32>
      %51 = arith.addf %48, %50 : vector<1x128xf32>
      %c0_31 = arith.constant 0 : index
      %c0_32 = arith.constant 0 : index
      %52 = vector.load %arg12[%c0_31, %c0_32] : memref<1x128xf32, #tpu.memory_space<vmem>>, vector<1x128xf32>
      tpu.vector_store %arg12[%c0_31, %c0_32], %51 {strides = array<i32>} : memref<1x128xf32, #tpu.memory_space<vmem>>, vector<1x128xf32>,
      %c0_33 = arith.constant 0 : index
      %c0_34 = arith.constant 0 : index
      %53 = vector.load %arg13[%c0_33, %c0_34] : memref<1x128xf32, #tpu.memory_space<vmem>>, vector<1x128xf32>
      %54 = arith.mulf %13, %13 : vector<8x128xf32>
      %cst_35 = arith.constant dense<0.000000e+00> : vector<128xf32>
      %55 = vector.multi_reduction <add>, %54, %cst_35 [0] : vector<8x128xf32> to vector<128xf32>
      %56 = vector.shape_cast %55 : vector<128xf32> to vector<1x128xf32>
      %57 = arith.addf %53, %56 : vector<1x128xf32>
      %c0_36 = arith.constant 0 : index
      %c0_37 = arith.constant 0 : index
      %58 = vector.load %arg13[%c0_36, %c0_37] : memref<1x128xf32, #tpu.memory_space<vmem>>, vector<1x128xf32>
      tpu.vector_store %arg13[%c0_36, %c0_37], %57 {strides = array<i32>} : memref<1x128xf32, #tpu.memory_space<vmem>>, vector<1x128xf32>,
    } else {
    }
    %c0_10 = arith.constant 0 : index
    %c0_11 = arith.constant 0 : index
    %17 = vector.load %arg12[%c0_10, %c0_11] : memref<1x128xf32, #tpu.memory_space<vmem>>, vector<1x128xf32>
    %cst_12 = arith.constant 1.250000e-01 : f32
    %18 = vector.broadcast %cst_12 : f32 to vector<1x128xf32>
    %19 = arith.mulf %17, %18 : vector<1x128xf32>
    %c0_13 = arith.constant 0 : index
    %c0_14 = arith.constant 0 : index
    %20 = vector.load %arg13[%c0_13, %c0_14] : memref<1x128xf32, #tpu.memory_space<vmem>>, vector<1x128xf32>
    %cst_15 = arith.constant 1.250000e-01 : f32
    %21 = vector.broadcast %cst_15 : f32 to vector<1x128xf32>
    %22 = arith.mulf %20, %21 : vector<1x128xf32>
    %23 = arith.mulf %19, %19 : vector<1x128xf32>
    %24 = arith.subf %22, %23 : vector<1x128xf32>
    %cst_16 = arith.constant 0.000000e+00 : f32
    %25 = vector.broadcast %cst_16 : f32 to vector<1x128xf32>
    %26 = arith.maximumf %24, %25 : vector<1x128xf32>
    %c0_17 = arith.constant 0 : index
    %c0_18 = arith.constant 0 : index
    %27 = vector.load %arg5[%c0_17, %c0_18] : memref<1x128xf32, #tpu.memory_space<vmem>>, vector<1x128xf32>
    %cst_19 = arith.constant 9.99999974E-6 : f32
    %28 = vector.broadcast %cst_19 : f32 to vector<1x128xf32>
    %29 = arith.addf %26, %28 : vector<1x128xf32>
    %30 = math.rsqrt %29 : vector<1x128xf32>
    %31 = arith.mulf %27, %30 : vector<1x128xf32>
    %c0_20 = arith.constant 0 : index
    %c0_21 = arith.constant 0 : index
    %32 = vector.load %arg6[%c0_20, %c0_21] : memref<1x128xf32, #tpu.memory_space<vmem>>, vector<1x128xf32>
    %33 = arith.mulf %19, %31 : vector<1x128xf32>
    %34 = arith.subf %32, %33 : vector<1x128xf32>
    %35 = vector.broadcast %31 : vector<1x128xf32> to vector<8x128xf32>
    %36 = arith.mulf %13, %35 : vector<8x128xf32>
    %37 = vector.broadcast %34 : vector<1x128xf32> to vector<8x128xf32>
    %38 = arith.addf %36, %37 : vector<8x128xf32>
    %39 = arith.truncf %38 : vector<8x128xf32> to vector<8x128xbf16>
    %c0_22 = arith.constant 0 : index
    %c0_23 = arith.constant 0 : index
    %40 = vector.load %arg7[%c0_22, %c0_23] : memref<128x8xbf16, #tpu.memory_space<vmem>>, vector<128x8xbf16>
    %cst_24 = arith.constant dense<0.000000e+00> : vector<8x8xf32>
    %41 = tpu.matmul %39, %40, %cst_24 {dimension_numbers = #tpu.dot_dimension_numbers<[1], [0], [0], [1], [0, 0, 1, 1], [], []>} : vector<8x128xbf16>, vector<128x8xbf16>, vector<8x8xf32> -> vector<8x8xf32>
    %c1_i32 = arith.constant 1 : i32
    %42 = arith.cmpi eq, %arg0, %c1_i32 : i32
    %43 = arith.extui %42 : i1 to i32
    %c0_i32_25 = arith.constant 0 : i32
    %44 = arith.cmpi ne, %43, %c0_i32_25 : i32
    scf.if %44 {
      %c0_28 = arith.constant 0 : index
      %c0_29 = arith.constant 0 : index
      %48 = vector.load %arg14[%c0_28, %c0_29] : memref<1x8xf32, #tpu.memory_space<vmem>>, vector<1x8xf32>
      %cst_30 = arith.constant dense<0.000000e+00> : vector<8xf32>
      %49 = vector.multi_reduction <add>, %41, %cst_30 [0] : vector<8x8xf32> to vector<8xf32>
      %50 = vector.shape_cast %49 : vector<8xf32> to vector<1x8xf32>
      %51 = arith.addf %48, %50 : vector<1x8xf32>
      %c0_31 = arith.constant 0 : index
      %c0_32 = arith.constant 0 : index
      %52 = vector.load %arg14[%c0_31, %c0_32] : memref<1x8xf32, #tpu.memory_space<vmem>>, vector<1x8xf32>
      tpu.vector_store %arg14[%c0_31, %c0_32], %51 {strides = array<i32>} : memref<1x8xf32, #tpu.memory_space<vmem>>, vector<1x8xf32>,
      %c0_33 = arith.constant 0 : index
      %c0_34 = arith.constant 0 : index
      %53 = vector.load %arg15[%c0_33, %c0_34] : memref<1x8xf32, #tpu.memory_space<vmem>>, vector<1x8xf32>
      %54 = arith.mulf %41, %41 : vector<8x8xf32>
      %cst_35 = arith.constant dense<0.000000e+00> : vector<8xf32>
      %55 = vector.multi_reduction <add>, %54, %cst_35 [0] : vector<8x8xf32> to vector<8xf32>
      %56 = vector.shape_cast %55 : vector<8xf32> to vector<1x8xf32>
      %57 = arith.addf %53, %56 : vector<1x8xf32>
      %c0_36 = arith.constant 0 : index
      %c0_37 = arith.constant 0 : index
      %58 = vector.load %arg15[%c0_36, %c0_37] : memref<1x8xf32, #tpu.memory_space<vmem>>, vector<1x8xf32>
      tpu.vector_store %arg15[%c0_36, %c0_37], %57 {strides = array<i32>} : memref<1x8xf32, #tpu.memory_space<vmem>>, vector<1x8xf32>,
    } else {
    }
    %c2_i32 = arith.constant 2 : i32
    %45 = arith.cmpi eq, %arg0, %c2_i32 : i32
    %46 = arith.extui %45 : i1 to i32
    %cst_26 = arith.constant 1.250000e-01 : f32
    %c0_i32_27 = arith.constant 0 : i32
    %47 = arith.cmpi ne, %46, %c0_i32_27 : i32
    scf.if %47 {
      %c0_28 = arith.constant 0 : index
      %c0_29 = arith.constant 0 : index
      %48 = vector.load %arg14[%c0_28, %c0_29] : memref<1x8xf32, #tpu.memory_space<vmem>>, vector<1x8xf32>
      %49 = vector.broadcast %cst_26 : f32 to vector<1x8xf32>
      %50 = arith.mulf %48, %49 : vector<1x8xf32>
      %c0_30 = arith.constant 0 : index
      %c0_31 = arith.constant 0 : index
      %51 = vector.load %arg15[%c0_30, %c0_31] : memref<1x8xf32, #tpu.memory_space<vmem>>, vector<1x8xf32>
      %52 = vector.broadcast %cst_26 : f32 to vector<1x8xf32>
      %53 = arith.mulf %51, %52 : vector<1x8xf32>
      %54 = arith.mulf %50, %50 : vector<1x8xf32>
      %55 = arith.subf %53, %54 : vector<1x8xf32>
      %cst_32 = arith.constant 0.000000e+00 : f32
      %56 = vector.broadcast %cst_32 : f32 to vector<1x8xf32>
      %57 = arith.maximumf %55, %56 : vector<1x8xf32>
      %c0_33 = arith.constant 0 : index
      %c0_34 = arith.constant 0 : index
      %58 = vector.load %arg8[%c0_33, %c0_34] : memref<1x8xf32, #tpu.memory_space<vmem>>, vector<1x8xf32>
      %cst_35 = arith.constant 9.99999974E-6 : f32
      %59 = vector.broadcast %cst_35 : f32 to vector<1x8xf32>
      %60 = arith.addf %57, %59 : vector<1x8xf32>
      %61 = math.rsqrt %60 : vector<1x8xf32>
      %62 = arith.mulf %58, %61 : vector<1x8xf32>
      %c0_36 = arith.constant 0 : index
      %c0_37 = arith.constant 0 : index
      %63 = vector.load %arg9[%c0_36, %c0_37] : memref<1x8xf32, #tpu.memory_space<vmem>>, vector<1x8xf32>
      %64 = arith.mulf %50, %62 : vector<1x8xf32>
      %65 = arith.subf %63, %64 : vector<1x8xf32>
      %66 = vector.broadcast %62 : vector<1x8xf32> to vector<8x8xf32>
      %67 = arith.mulf %41, %66 : vector<8x8xf32>
      %68 = vector.broadcast %65 : vector<1x8xf32> to vector<8x8xf32>
      %69 = arith.addf %67, %68 : vector<8x8xf32>
      %c0_38 = arith.constant 0 : index
      %c0_39 = arith.constant 0 : index
      %70 = vector.load %arg10[%c0_38, %c0_39] : memref<8x8xf32, #tpu.memory_space<vmem>>, vector<8x8xf32>
      tpu.vector_store %arg10[%c0_38, %c0_39], %69 {strides = array<i32>} : memref<8x8xf32, #tpu.memory_space<vmem>>, vector<8x8xf32>,
      %71 = vector.extract_strided_slice %38 {offsets = [0, 0], sizes = [8, 100], strides = [1, 1]} : vector<8x128xf32> to vector<8x100xf32>
      %c0_40 = arith.constant 0 : index
      %c0_41 = arith.constant 0 : index
      %72 = vector.load %arg11[%c0_40, %c0_41] : memref<8x100xf32, #tpu.memory_space<vmem>>, vector<8x100xf32>
      tpu.vector_store %arg11[%c0_40, %c0_41], %71 {strides = array<i32>} : memref<8x100xf32, #tpu.memory_space<vmem>>, vector<8x100xf32>,
    } else {
    }
    return
  }
  func.func @transform_0(%arg0: i32, %arg1: i32) -> (i32, i32) {
    %c0_i32 = arith.constant 0 : i32
    %c0_i32_0 = arith.constant 0 : i32
    return %arg1, %c0_i32 : i32, i32
  }
  func.func @transform_1(%arg0: i32, %arg1: i32) -> (i32, i32) {
    %c0_i32 = arith.constant 0 : i32
    %c0_i32_0 = arith.constant 0 : i32
    %c0_i32_1 = arith.constant 0 : i32
    return %c0_i32, %c0_i32_0 : i32, i32
  }
  func.func @transform_2(%arg0: i32, %arg1: i32) -> (i32, i32) {
    %c0_i32 = arith.constant 0 : i32
    %c0_i32_0 = arith.constant 0 : i32
    %c0_i32_1 = arith.constant 0 : i32
    return %c0_i32, %c0_i32_0 : i32, i32
  }
  func.func @transform_3(%arg0: i32, %arg1: i32) -> (i32, i32) {
    %c0_i32 = arith.constant 0 : i32
    %c0_i32_0 = arith.constant 0 : i32
    %c0_i32_1 = arith.constant 0 : i32
    return %c0_i32, %c0_i32_0 : i32, i32
  }
  func.func @transform_4(%arg0: i32, %arg1: i32) -> (i32, i32) {
    %c0_i32 = arith.constant 0 : i32
    %c0_i32_0 = arith.constant 0 : i32
    %c0_i32_1 = arith.constant 0 : i32
    return %c0_i32, %c0_i32_0 : i32, i32
  }
  func.func @transform_5(%arg0: i32, %arg1: i32) -> (i32, i32) {
    %c0_i32 = arith.constant 0 : i32
    %c0_i32_0 = arith.constant 0 : i32
    %c0_i32_1 = arith.constant 0 : i32
    return %c0_i32, %c0_i32_0 : i32, i32
  }
  func.func @transform_6(%arg0: i32, %arg1: i32) -> (i32, i32) {
    %c0_i32 = arith.constant 0 : i32
    %c0_i32_0 = arith.constant 0 : i32
    %c0_i32_1 = arith.constant 0 : i32
    return %c0_i32, %c0_i32_0 : i32, i32
  }
  func.func @transform_7(%arg0: i32, %arg1: i32) -> (i32, i32) {
    %c0_i32 = arith.constant 0 : i32
    %c0_i32_0 = arith.constant 0 : i32
    %c0_i32_1 = arith.constant 0 : i32
    return %c0_i32, %c0_i32_0 : i32, i32
  }
  func.func @transform_8(%arg0: i32, %arg1: i32) -> (i32, i32) {
    %c0_i32 = arith.constant 0 : i32
    %c0_i32_0 = arith.constant 0 : i32
    return %arg1, %c0_i32 : i32, i32
  }
  func.func @transform_9(%arg0: i32, %arg1: i32) -> (i32, i32) {
    %c0_i32 = arith.constant 0 : i32
    %c0_i32_0 = arith.constant 0 : i32
    return %arg1, %c0_i32 : i32, i32
  }
}

</mosaic_0001>

<bundles_post_ra>
// kernel: ddc2_forward.1
= control target key start
LH: loop header
LB: loop body
LE: loop exit
PB: predicated region body
PF: predicated region fallthrough
CT: control target
= control target key end

     0   :  { %15 = vsyncpa [#allocation7], 0  ;;  %s1119_s0 = inlined_call_operand.vmem [shape: f32[8,32], index: 0, kind: input, shape index: {}]   ;;  %s1120_s1 = inlined_call_operand.vmem [shape: bf16[32,128], index: 1, kind: input, shape index: {}]   ;;  %s1121_s2 = inlined_call_operand.vmem [shape: f32[1,128], index: 2, kind: input, shape index: {}]   ;;  %s1122_s3 = inlined_call_operand.vmem [shape: f32[1,128], index: 3, kind: input, shape index: {}]   ;;  %s1123_s4 = inlined_call_operand.vmem [shape: f32[1,128], index: 4, kind: input, shape index: {}]   ;;  %s1124_s5 = inlined_call_operand.vmem [shape: bf16[128,8], index: 5, kind: input, shape index: {}]   ;;  %s1125_s6 = inlined_call_operand.vmem [shape: f32[1,8], index: 6, kind: input, shape index: {}]   ;;  %s1126_s7 = inlined_call_operand.vmem [shape: f32[1,8], index: 7, kind: input, shape index: {}]   ;;  %s1127_s8 = inlined_call_operand.hbm [shape: f32[8,8], index: 8, kind: output, shape index: {0}]   ;;  %s1128_s9 = inlined_call_operand.hbm [shape: f32[8,100], index: 9, kind: output, shape index: {1}]  }
   0x1   :  { %16 = vsyncpa [#allocation9], 0  ;;  %s982_s30 = smov 0   ;;  %s984_s10 = smov 0  }
   0x2   :  { %s986_s11 = smov 0  }
   0x3 LB: > { %s725_s12 = sadd.s32 4294967295, %s925_s11   ;;  %s34_s13 = sadd.s32 1, %s921_s10  ;;  %s925_s11 = sphi %s986_s11, %s22_s11   ;;  %s921_s10 = sphi %s984_s10, %s1131_s10   ;;  %s917_s30 = sphi %s982_s30, %s1130_s30  }
   0x4   : > { %p36_p0 = scmp.ge.s32.totalorder %s34_s13, 3  ;;  %p728_p1 = scmp.ge.s32.totalorder %s925_s11, 1 }
   0x5   : > { %p303_p2 = scmp.lt.s32.totalorder %s925_s11, 4 }
   0x6   : > { %s1133_s13 = smov (%p36_p0, %s34_s13), 0 }
   0x7   : > { %p304_p3 = pnand %p728_p1, %p303_p2 }
   0x8   : > { %p338_p4 = scmp.eq.s32.totalorder (!%p304_p3), %s917_s30, 0 }
   0x9   : > { %307 = sbr.rel (%p304_p3) target bundleno = 573 (0x23d), region = 52 }
   0xe   : > { %343 = sbr.rel (!%p338_p4) target bundleno = 19 (0x13), region = 56  ;;  %vm346_vm0 = vcmask (%p338_p4), 57344   ;;  %v927_v0 = vmov (%p338_p4), 0.0  }
   0xf   : > { %344 = vst [vmem:[#allocation2] sm:$0x1] (%p338_p4), %v927_v0  ;;  %345 = vst [vmem:[#allocation3] sm:$0x1] (%p338_p4), %v927_v0 }
  0x10   : > { %347 = vst.msk [vmem:[#allocation4] sm:$0x1] (%p338_p4), %vm346_vm0, %v927_v0  ;;  %348 = vst.msk [vmem:[#allocation5] sm:$0x1] (%p338_p4), %vm346_vm0, %v927_v0 }
  0x13 PF: > { %v833_v1 = vld [vmem:[%s1120_s1 + $0x8] sm:$0xff]   ;;  %v928_v2 = vmov 0.0   ;;  %v834_v3 = vld [vmem:[%s1120_s1] sm:$0xff]   ;;  %vm929_vm1 = vmmov 0   ;;  %vm374_vm2 = vcmask 261120   ;;  %p734_p5 = scmp.ne.s32.totalorder %s917_s30, 0 }
  0x14   : > { %764 = vmatprep.subr.bf16.mxu0 %v928_v2  ;;  %768 = vmatprep.mubr.msk.bf16.mxu0 %vm929_vm1, %v928_v2  ;;  %v349_v4 = vld [vmem:[%s1119_s0] sm:$0xff] }
  0x15   : > { %765 = vmatpush3.bf16.msra.mxu0 %v833_v1  ;;  %v350_v5 = vpack.c.bf16 %v349_v4, %v349_v4  ;;  %v730_v6 = vld [vmem:[%s1121_s2] ss:$0 sm:$0xff] }
  0x16   : > { %766 = vmatprep.subr.bf16.mxu0 %v928_v2 }
  0x19   : > { %767 = vmatpush3.bf16.msra.mxu0 %v834_v3 }
  0x1c   : > { %769 = vmatmul.mubr.msk.bf16.vlgmr.msra.gmra.mxu0 %vm374_vm2, %v350_v5 }
  0xdc   : > { %v412_v7 = vpop.f32.mrf.mxu0 }
  0xdd   : > { %v413_v8 = vadd.f32 %v730_v6, %v412_v7 }
  0xde   : > { %v770_v9 = vpop.f32.mrf.mxu0  ;;  %421 = sbr.rel (%p734_p5) target bundleno = 244 (0xf4), region = 60 }
  0xdf   : > { %v1020_v10 = vmax.f32 %v413_v8, 0.0 }
  0xe0   : > { %v415_v11 = vpop.f32.mrf.mxu0 }
  0xe2   : > { %v771_v12 = vpop.f32.mrf.mxu0 }
  0xe3   : > { %v423_v13 = vrot.slane %v1020_v10, 4  ;;  %v432_v14 = vmul.f32 %v1020_v10, %v1020_v10  ;;  %v422_v23 = vld [vmem:[#allocation2] sm:$0x1]  ;;  %v431_v26 = vld [vmem:[#allocation3] sm:$0x1] }
  0xe5   : > { %v424_v15 = vadd.f32 %v423_v13, %v1020_v10  ;;  %v433_v16 = vrot.slane %v432_v14, 4 }
  0xe7   : > { %v425_v17 = vrot.slane %v424_v15, 2  ;;  %v434_v18 = vadd.f32 %v433_v16, %v432_v14 }
  0xe9   : > { %v426_v19 = vadd.f32 %v425_v17, %v424_v15  ;;  %v435_v20 = vrot.slane %v434_v18, 2 }
  0xeb   : > { %v427_v21 = vrot.slane %v426_v19, 1  ;;  %v436_v22 = vadd.f32 %v435_v20, %v434_v18 }
  0xed   : > { %v428_v24 = vadd.f32 %v427_v21, %v426_v19  ;;  %v437_v25 = vrot.slane %v436_v22, 1 }
  0xef   : > { %v429_v27 = vadd.f32 %v428_v24, %v422_v23  ;;  %v438_v28 = vadd.f32 %v437_v25, %v436_v22 }
  0xf1   : > { %430 = vst [vmem:[#allocation2] sm:$0x1] %v429_v27  ;;  %v439_v29 = vadd.f32 %v438_v28, %v431_v26 }
  0xf3   : > { %440 = vst [vmem:[#allocation3] sm:$0x1] %v439_v29 }
  0xf4 PF: > { %772 = vmatprep.subr.bf16.mxu1 %v928_v2  ;;  %v835_v30 = vld [vmem:[%s1124_s5 + $0x38] sm:$0xff]   ;;  %788 = vmatprep.mubr.msk.bf16.mxu1 %vm929_vm1, %v928_v2  ;;  %v836_v31 = vld [vmem:[%s1124_s5 + $0x30] sm:$0xff]   ;;  %v837_v32 = vld [vmem:[%s1124_s5 + $0x28] sm:$0xff]   ;;  %v456_v45 = vlaneseq  ;;  %p743_p6 = scmp.ne.s32.totalorder %s917_s30, 1 }
  0xf5   : > { %773 = vmatpush3.bf16.msra.mxu1 %v835_v30  ;;  %v838_v37 = vld [vmem:[%s1124_s5 + $0x20] sm:$0xff]   ;;  %v839_v40 = vld [vmem:[%s1124_s5 + $0x18] sm:$0xff]   ;;  %v840_v43 = vld [vmem:[%s1124_s5 + $0x10] sm:$0xff]  }
  0xf6   : > { %774 = vmatprep.subr.bf16.mxu1 %v928_v2  ;;  %v841_v44 = vld [vmem:[%s1124_s5 + $0x8] sm:$0xff]   ;;  %v842_v46 = vld [vmem:[%s1124_s5] sm:$0xff]   ;;  %v457_v47 = vshrl.u32 %v456_v45, 7 }
  0xf7   : > { %v448_v48 = vld [vmem:[%s1122_s3] sm:$0x1] }
  0xf8   : > { %v441_v33 = vld [vmem:[#allocation2] sm:$0x1]  ;;  %v1064_v49 = vsub.s32 0, %v457_v47 }
  0xf9   : > { %775 = vmatpush3.bf16.msra.mxu1 %v836_v31  ;;  %v442_v35 = vmul.f32 0.125, %v441_v33  ;;  %v452_v52 = vld [vmem:[%s1123_s4] sm:$0x1] }
  0xfa   : > { %776 = vmatprep.subr.bf16.mxu1 %v928_v2  ;;  %v443_v34 = vld [vmem:[#allocation3] sm:$0x1] }
  0xfb   : > { %v444_v36 = vmul.f32 0.125, %v443_v34  ;;  %v445_v38 = vmul.f32 %v442_v35, %v442_v35 }
  0xfd   : > { %777 = vmatpush3.bf16.msra.mxu1 %v837_v32  ;;  %v446_v39 = vsub.f32 %v444_v36, %v445_v38 }
  0xfe   : > { %778 = vmatprep.subr.bf16.mxu1 %v928_v2 }
  0xff   : > { %v447_v41 = vmax.f32 %v446_v39, 0.0 }
 0x101   : > { %779 = vmatpush3.bf16.msra.mxu1 %v838_v37  ;;  %v449_v42 = vadd.f32 1e-05, %v447_v41 }
 0x102   : > { %780 = vmatprep.subr.bf16.mxu1 %v928_v2 }
 0x103   : > { %843 = vrsqrt.f32 %v449_v42 }
 0x105   : > { %781 = vmatpush3.bf16.msra.mxu1 %v839_v40 }
 0x106   : > { %782 = vmatprep.subr.bf16.mxu1 %v928_v2 }
 0x109   : > { %783 = vmatpush3.bf16.msra.mxu1 %v840_v43 }
 0x10a   : > { %784 = vmatprep.subr.bf16.mxu1 %v928_v2 }
 0x10d   : > { %785 = vmatpush3.bf16.msra.mxu1 %v841_v44 }
 0x10e   : > { %786 = vmatprep.subr.bf16.mxu1 %v928_v2 }
 0x110   : > { %v844_v50 = vpop.eup %843 }
 0x111   : > { %787 = vmatpush3.bf16.msra.mxu1 %v842_v46  ;;  %v451_v51 = vmul.f32 %v844_v50, %v448_v48 }
 0x113   : > { %v453_v53 = vmul.f32 %v451_v51, %v442_v35  ;;  %v459_v54 = vrot.slane %v451_v51, %v1064_v49 }
 0x115   : > { %v454_v55 = vsub.f32 %v452_v52, %v453_v53  ;;  %v461_v56 = vmul.f32 %v459_v54, %v1020_v10 }
 0x117   : > { %v466_v57 = vrot.slane %v454_v55, %v1064_v49 }
 0x119   : > { %v468_v58 = vadd.f32 %v466_v57, %v461_v56 }
 0x11b   : > { %v469_v59 = vpack.c.bf16 %v468_v58, %v468_v58 }
 0x11d   : > { %789 = vmatmul.mubr.bf16.vlgmr.msra.gmra.mxu1 %v469_v59 }
 0x1dd   : > { %v568_v60 = vpop.f32.mrf.mxu1 }
 0x1df   : > { %v790_v61 = vpop.f32.mrf.mxu1  ;;  %577 = sbr.rel (%p743_p6) target bundleno = 502 (0x1f6), region = 64 }
 0x1e1   : > { %v571_v62 = vpop.f32.mrf.mxu1 }
 0x1e3   : > { %v791_v63 = vpop.f32.mrf.mxu1 }
 0x1e4   : > { %vm579_vm3 = vcmask 64512   ;;  %v591_v0 = vmul.f32 %v568_v60, %v568_v60  ;;  %v578_v12 = vld [vmem:[#allocation4] sm:$0x1]  ;;  %v590_v15 = vld [vmem:[#allocation5] sm:$0x1]  ;;  %vm588_vm4 = vcmask 57344  }
 0x1e5   : > { %v580_v1 = vsel %vm579_vm3, %v568_v60, 0.0 }
 0x1e6   : > { %v581_v2 = vrot.slane %v580_v1, 4  ;;  %v592_v3 = vsel %vm579_vm3, %v591_v0, 0.0 }
 0x1e7   : > { %v593_v4 = vrot.slane %v592_v3, 4 }
 0x1e8   : > { %v582_v5 = vadd.f32 %v581_v2, %v580_v1 }
 0x1e9   : > { %v594_v6 = vadd.f32 %v593_v4, %v592_v3 }
 0x1ea   : > { %v583_v7 = vrot.slane %v582_v5, 2 }
 0x1eb   : > { %v595_v8 = vrot.slane %v594_v6, 2 }
 0x1ec   : > { %v584_v9 = vadd.f32 %v583_v7, %v582_v5 }
 0x1ed   : > { %v596_v10 = vadd.f32 %v595_v8, %v594_v6 }
 0x1ee   : > { %v585_v11 = vrot.slane %v584_v9, 1 }
 0x1ef   : > { %v597_v13 = vrot.slane %v596_v10, 1 }
 0x1f0   : > { %v586_v14 = vadd.f32 %v585_v11, %v584_v9 }
 0x1f1   : > { %v598_v16 = vadd.f32 %v597_v13, %v596_v10 }
 0x1f2   : > { %v587_v17 = vadd.f32 %v586_v14, %v578_v12 }
 0x1f3   : > { %v599_v18 = vadd.f32 %v598_v16, %v590_v15 }
 0x1f4   : > { %589 = vst.msk [vmem:[#allocation4] sm:$0x1] %vm588_vm4, %v587_v17 }
 0x1f5   : > { %600 = vst.msk [vmem:[#allocation5] sm:$0x1] %vm588_vm4, %v599_v18 }
 0x1f6 PF: > { %p744_p7 = scmp.ne.s32.totalorder %s917_s30, 2 }
 0x1f8   : > { %604 = sbr.rel (%p744_p7) target bundleno = 545 (0x221), region = 68 }
 0x1fd   : > { %v605_v19 = vld [vmem:[#allocation4] sm:$0x1]  ;;  %v607_v20 = vld [vmem:[#allocation5] sm:$0x1]  ;;  %vm635_vm5 = vcmask 818176   ;;  %vm633_vm6 = vcmask 64512  }
 0x1fe   : > { %v606_v21 = vmul.f32 0.125, %v605_v19  ;;  %v608_v22 = vmul.f32 0.125, %v607_v20  ;;  %636 = vst.msk [vmem:[#allocation8] sm:$0xff] %vm635_vm5, %v468_v58  ;;  %v612_v27 = vld [vmem:[%s1125_s6] sm:$0x1] }
 0x1ff   : > { %v616_v30 = vld [vmem:[%s1126_s7] sm:$0x1] }
 0x200   : > { %v609_v23 = vmul.f32 %v606_v21, %v606_v21 }
 0x202   : > { %v610_v24 = vsub.f32 %v608_v22, %v609_v23 }
 0x204   : > { %v611_v25 = vmax.f32 %v610_v24, 0.0 }
 0x206   : > { %v613_v26 = vadd.f32 1e-05, %v611_v25 }
 0x208   : > { %845 = vrsqrt.f32 %v613_v26 }
 0x215   : > { %v846_v28 = vpop.eup %845 }
 0x216   : > { %v615_v29 = vmul.f32 %v846_v28, %v612_v27 }
 0x218   : > { %v617_v31 = vmul.f32 %v615_v29, %v606_v21  ;;  %v623_v32 = vrot.slane %v615_v29, %v1064_v49 }
 0x21a   : > { %v618_v33 = vsub.f32 %v616_v30, %v617_v31  ;;  %v625_v34 = vmul.f32 %v623_v32, %v568_v60 }
 0x21c   : > { %v630_v35 = vrot.slane %v618_v33, %v1064_v49 }
 0x21e   : > { %v632_v36 = vadd.f32 %v630_v35, %v625_v34 }
 0x220   : > { %634 = vst.msk [vmem:[#allocation6] sm:$0xff] %vm633_vm6, %v632_v36 }
 0x221 PF: > { %p1084_p8 = scmp.eq.s32.totalorder %s725_s12, 2  ;;  %s930_s14 = smov [#allocation6]  }
 0x222   : > { %s646_s15 = sshll.u32 %s930_s14, 4  ;;  %s931_s16 = smov [#allocation8]   ;;  %s647_s15 = int_to_ptr.vmem [resolvable:$true] %s646_s15 }
 0x223   : > { %s659_s17 = sshll.u32 %s931_s16, 4  ;;  %s847_s18 = scalar_lea.vmem %s647_s15, 128  ;;  %s660_s17 = int_to_ptr.vmem [resolvable:$true] %s659_s17 }
 0x224   : > { %p848_p9 = scmp.ne.s32.totalorder %s647_s15, %s847_s18  ;;  %p854_p12 = scmp.lt.s32.totalorder %s647_s15, %s647_s15 }
 0x225   : > { %p855_p13 = scmp.lt.s32.totalorder %s847_s18, %s847_s18 }
 0x226   : > { %p849_p10 = pnand %p848_p9, %p1084_p8 }
 0x227   : > { %p856_p0 = por %p855_p13, %p854_p12 }
 0x228   : > { %p850_p11 = pneg %p849_p10 }
 0x22a   : > { %p857_p1 = pnand %p856_p0, %p850_p11 }
 0x22c   : > { %860 = shalt.err (!%p857_p1)
}
 0x22d   : > { %793 = dma.vmem_to_hbm [thread:$0]  (%p1084_p8), %s647_s15, 128, %s1127_s8, [#allocation7]  }
 0x22e   : > { %s871_s20 = scalar_lea.vmem %s660_s17, 128  ;;  %p878_p5 = scmp.lt.s32.totalorder %s660_s17, %s660_s17 }
 0x22f   : > { %p872_p2 = scmp.ne.s32.totalorder %s660_s17, %s871_s20  ;;  %p879_p6 = scmp.lt.s32.totalorder %s871_s20, %s871_s20 }
 0x231   : > { %p873_p3 = pnand %p872_p2, %p1084_p8  ;;  %p880_p7 = por %p879_p6, %p878_p5 }
 0x233   : > { %p874_p4 = pneg %p873_p3 }
 0x235   : > { %p881_p9 = pnand %p880_p7, %p874_p4 }
 0x237   : > { %884 = shalt.err (!%p881_p9)
}
 0x238   : > { %795 = dma.vmem_to_hbm [thread:$0]  (%p1084_p8), %s660_s17, 128, %s1128_s9, [#allocation9]  }
 0x239   : > { %908 = dma.done.wait (%p1084_p8), [#allocation7], 128  }
 0x23a   : > { %910 = vsyncadd (%p1084_p8), [#allocation7], 4294967168 }
 0x23b   : > { %912 = dma.done.wait (%p1084_p8), [#allocation9], 128  }
 0x23c   : > { %914 = vsyncadd (%p1084_p8), [#allocation9], 4294967168 }
 0x23d PF: > { %s22_s11 = sadd.s32 1, %s925_s11   ;;  %s1130_s30 = smov %s921_s10 }
 0x23e   : > { %p19_p10 = scmp.ge.s32.totalorder %s22_s11, 5   ;;  %s1131_s10 = smov %s1133_s13 }
 0x240   :  { %21 = sbr.rel (!%p19_p10) target bundleno = 3 (0x3), region = 105 }
 0x245   :  { %676 = vsyncpa [#allocation7], 1 }
 0x246   :  { %678 = vsyncpa [#allocation7 + $0x1], 1 }
 0x247   :  { %679 = vsyncpa [#allocation9], 1 }

</bundles_post_ra>
